<compile_context>
chip_gen: v5e
topology: v5e:2x2
jax: 0.10.0
libtpu: 0.0.40
codegen_flags: <defaults>
</compile_context>

<pallas_src>
import functools

import jax
import jax.numpy as jnp
from jax.experimental import pallas as pl
from jax.experimental.pallas import tpu as pltpu


def _conv3x3_kernel(x_ref, w_ref, o_ref, *, W, P):
    """One (batch-block, spatial-tile) grid step of the 3x3 'same' convolution.

    x_ref : (Bt, 1, Cin, THW + 2P)  halo'd flat row-band (zero-padded image)
    w_ref : (Cout, 9*Cin)           weights flattened in (kh, kw, cin) order
    o_ref : (Bt, Cout, THW)         output tile, flat spatial on the lane axis
    """
    Bt = o_ref.shape[0]
    THW = o_ref.shape[2]

    # Column-validity masks (the row out-of-image cases read zeros from the pad, so only
    # the dw = +-1 column masks are needed).  Computed once per grid step, hoisted out of
    # the batch loop.
    base = pl.program_id(1) * THW
    col = (base + jax.lax.broadcasted_iota(jnp.int32, (1, THW), 1)) % W
    left_ok = col > 0            # valid source pixel exists for dw == -1 taps
    right_ok = col < (W - 1)     # valid source pixel exists for dw == +1 taps

    for b in range(Bt):
        band = x_ref[b, 0]                       # (Cin, THW + 2P), loaded once
        pieces = []
        for dh in (-1, 0, 1):
            for dw in (-1, 0, 1):
                off = P + dh * W + dw            # static lane offset, 0 <= off <= 2P
                seg = band[:, off:off + THW]     # (Cin, THW), static slice
                if dw == -1:
                    seg = jnp.where(left_ok, seg, 0)
                elif dw == 1:
                    seg = jnp.where(right_ok, seg, 0)
                pieces.append(seg)
        # TODO(synk): on v7x (and bf16-output v6e) a sublane-aligned VMEM-scratch patch
        # assembly would cut the vld/vst cost of this concatenate; kept simple here.
        patches = jnp.concatenate(pieces, axis=0)                     # (9*Cin, THW)

        # Single MXU matmul, f32 accumulation, cast on store.
        acc = jnp.dot(w_ref[...], patches, preferred_element_type=jnp.float32)
        o_ref[b] = acc.astype(o_ref.dtype)


def _pick_tiling(N, H, W, Cout, out_isz, target, hard_cap):
    """Pick the flat-spatial tile length THW (lane dim of every output block)."""
    HW = H * W
    per = Cout * out_isz
    # Exact candidates: whole numbers of image rows with a 128-multiple lane count
    # (or the full image, which is always a legal full-dim block).
    cands = sorted({th * W for th in range(1, H + 1)
                    if H % th == 0 and ((th * W) % 128 == 0 or th == H)})
    fit = [c for c in cands if c * per <= target]
    if fit:
        thw = max(fit)
        if thw == HW and N == 1:
            multi = [c for c in fit if c < HW]
            if multi:                      # keep >=2 grid steps so both TCs get work
                thw = max(multi)
        return thw, False
    small = [c for c in cands if c * per <= hard_cap]
    if small:
        return min(small), False           # larger than target but still fits VMEM
    # Awkward shapes (no friendly row divisor): 128-aligned tiles + padded tail that is
    # sliced off in the wrapper (rare; correctness over peak bandwidth).
    return max(128, (target // per) // 128 * 128), True


def overlap_patch_embed(x_nchw, weight_oihw, out_dtype=None):
    """OverlapPatchEmbed forward: 3x3 stride-1 'same' conv, no bias.

    x_nchw      : (N, Cin, H, W)
    weight_oihw : (Cout, Cin, 3, 3)   (PyTorch Conv2d layout)
    out_dtype   : optional override (e.g. jnp.bfloat16); defaults to x_nchw.dtype.
    returns     : (N, Cout, H, W)
    """
    N, Cin, H, W = x_nchw.shape
    Cout = weight_oihw.shape[0]
    HW = H * W
    P = W + 1                              # flat halo for the (-1,-1)/(+1,+1) corner taps
    K = 9 * Cin
    out_dtype = x_nchw.dtype if out_dtype is None else jnp.dtype(out_dtype)
    in_isz = jnp.dtype(x_nchw.dtype).itemsize
    out_isz = jnp.dtype(out_dtype).itemsize

    # ---- hardware-aware budgets ---------------------------------------------------
    try:
        vmem_cap = int(pltpu.get_tpu_info().vmem_capacity_bytes)
    except Exception:  # conservative default if the query is unavailable
        vmem_cap = 64 * 1024 * 1024
    big_vmem = vmem_cap >= 96 * 1024 * 1024
    target = (8 if big_vmem else 3) * 1024 * 1024            # output-tile byte target
    ceiling = min(96 * 1024 * 1024, (vmem_cap * 3) // 4)     # never request all of VMEM

    THW, padded_tail = _pick_tiling(N, H, W, Cout, out_isz, target, ceiling // 8)
    T = -(-HW // THW) if padded_tail else HW // THW
    BAND = THW + 2 * P

    # Batch-block tiny images so several go into one grid step (keeps >=2 grid steps).
    Bt = 1
    if T == 1 and N > 1:
        for d in range(N // 2, 0, -1):
            if N % d == 0 and d * Cout * THW * out_isz <= target:
                Bt = d
                break
    NB = N // Bt

    # ---- inputs: zero-padded flat image + T static overlapping row-bands -----------
    x_flat = x_nchw.reshape(N, Cin, HW)
    Lp = T * THW + 2 * P
    x_pad = jnp.pad(x_flat, ((0, 0), (0, 0), (P, Lp - P - HW)))
    if T == 1:
        bands = x_pad[:, None]                                 # (N, 1, Cin, BAND)
    else:
        bands = jnp.stack(
            [x_pad[:, :, t * THW: t * THW + BAND] for t in range(T)], axis=1)

    # Weights flattened once to (Cout, 9*Cin), rows ordered (kh, kw, cin) to match the
    # kernel's tap emission order; matched to the input dtype so bf16 runs MXU-native.
    w_flat = jnp.transpose(weight_oihw, (0, 2, 3, 1)).reshape(Cout, K)
    w_flat = w_flat.astype(x_nchw.dtype)

    # ---- VMEM budget check ----------------------------------------------------------
    in_blk = Bt * Cin * BAND * in_isz
    out_blk = Bt * Cout * THW * out_isz
    w_b = Cout * K * in_isz
    tmp = Bt * (2 * K * THW * in_isz + Cout * THW * 4)
    need = 2 * (in_blk + out_blk) + 2 * w_b + tmp + (2 << 20)
    if need > ceiling:
        raise ValueError(
            f"OverlapPatchEmbed tiling needs ~{need >> 20} MiB VMEM, over the "
            f"{ceiling >> 20} MiB budget for this TPU; reduce the image size.")
    vmem_limit = int(min(ceiling, max(32 << 20, 2 * need)))

    kernel = functools.partial(_conv3x3_kernel, W=W, P=P)

    out_flat = pl.pallas_call(
        kernel,
        out_shape=jax.ShapeDtypeStruct((N, Cout, T * THW), out_dtype),
        grid_spec=pltpu.PrefetchScalarGridSpec(
            num_scalar_prefetch=0,
            grid=(NB, T),
            in_specs=[
                pl.BlockSpec((Bt, 1, Cin, BAND), lambda n, t: (n, t, 0, 0)),
                pl.BlockSpec((Cout, K), lambda n, t: (0, 0)),
            ],
            out_specs=pl.BlockSpec((Bt, Cout, THW), lambda n, t: (n, 0, t)),
        ),
        compiler_params=pltpu.CompilerParams(
            dimension_semantics=("parallel", "parallel"),
            vmem_limit_bytes=vmem_limit,
        ),
    )(bands, w_flat)

    if T * THW != HW:                       # rare padded-tail path only
        out_flat = out_flat[:, :, :HW]
    return out_flat.reshape(N, Cout, H, W)  # contiguous split: free, already NCHW


if __name__ == "__main__":
    Cout = 48                                # embed_dim default of OverlapPatchEmbed
    key = jax.random.PRNGKey(0)

    def make(k, N, Cin, H, W, dtype=jnp.float32):
        kx, kw = jax.random.split(k)
        x = jax.random.normal(kx, (N, Cin, H, W), dtype=jnp.float32).astype(dtype)
        fan_in = Cin * 9
        w = jax.random.uniform(kw, (Cout, Cin, 3, 3), jnp.float32,
                               minval=-1.0 / fan_in ** 0.5,
                               maxval=1.0 / fan_in ** 0.5).astype(dtype)
        return x, w

    def ref_conv(x, w):
        return jax.lax.conv_general_dilated(
            x.astype(jnp.float32), w.astype(jnp.float32), (1, 1), "SAME",
            dimension_numbers=("NCHW", "OIHW", "NCHW"))

    configs = [
        (2, 3, 16, 16),   # module defaults, small (single tile per image)
        (1, 3, 48, 48),   # single image -> multi-tile grid (both TensorCores)
        (8, 3, 8, 8),     # tiny images -> batch-blocked grid steps
    ]
    keys = jax.random.split(key, len(configs))
    for cfg, k in zip(configs, keys):
        N, Cin, H, W = cfg
        x, w = make(k, N, Cin, H, W)
        out = jax.block_until_ready(overlap_patch_embed(x, w))
        ref = ref_conv(x, w)
        assert out.shape == (N, Cout, H, W)
        assert jnp.allclose(out, ref, atol=1e-4, rtol=1e-4), \
            (cfg, float(jnp.max(jnp.abs(out - ref))))

    # bf16 path: output follows the input dtype, accumulation stays f32 on the MXU.
    xb, wb = make(keys[0], 2, 3, 16, 16, dtype=jnp.bfloat16)
    out_bf16 = jax.block_until_ready(overlap_patch_embed(xb, wb))
    ref_b = ref_conv(xb, wb)
    assert out_bf16.dtype == jnp.bfloat16
    assert float(jnp.mean(jnp.abs(out_bf16.astype(jnp.float32) - ref_b))) < 0.05

    print("KERNEL_OK")
</pallas_src>

<mosaic_0001>
module attributes {stable_mosaic.version = 11 : i64} {
  func.func @_conv3x3_kernel(%arg0: i32, %arg1: i32, %arg2: memref<1x1x3x290xf32, #tpu.memory_space<vmem>>, %arg3: memref<48x27xf32, #tpu.memory_space<vmem>>, %arg4: memref<1x48x256xf32, #tpu.memory_space<vmem>>) attributes {dimension_semantics = [#tpu.dimension_semantics<parallel>, #tpu.dimension_semantics<parallel>], iteration_bounds = array<i64: 2, 1>, scalar_prefetch = 0 : i64, scratch_operands = 0 : i64, tpu.core_type = #tpu.core_type<tc>, window_params = [{transform_indices = @transform_0, window_bounds = array<i64: 1, 1, 3, 290>}, {pipeline_mode = #tpu.pipeline_mode<synchronous>, transform_indices = @transform_1, window_bounds = array<i64: 48, 27>}, {transform_indices = @transform_2, window_bounds = array<i64: 1, 48, 256>}]} {
    %c256_i32 = arith.constant 256 : i32
    %0 = arith.muli %arg1, %c256_i32 : i32
    %1 = tpu.iota {dimensions = array<i32: 1>} : vector<1x256xi32>
    %2 = vector.broadcast %0 : i32 to vector<1x256xi32>
    %3 = arith.addi %2, %1 : vector<1x256xi32>
    %c16_i32 = arith.constant 16 : i32
    %c0_i32 = arith.constant 0 : i32
    %4 = arith.cmpi eq, %c16_i32, %c0_i32 : i32
    %c1_i32 = arith.constant 1 : i32
    %5 = arith.select %4, %c1_i32, %c16_i32 : i32
    %6 = vector.broadcast %5 : i32 to vector<1x256xi32>
    %7 = arith.remsi %3, %6 : vector<1x256xi32>
    %c0_i32_0 = arith.constant 0 : i32
    %8 = vector.broadcast %c0_i32_0 : i32 to vector<1x256xi32>
    %9 = arith.cmpi ne, %7, %8 : vector<1x256xi32>
    %c0_i32_1 = arith.constant 0 : i32
    %10 = vector.broadcast %c0_i32_1 : i32 to vector<1x256xi32>
    %11 = arith.cmpi slt, %7, %10 : vector<1x256xi32>
    %c0_i32_2 = arith.constant 0 : i32
    %12 = arith.cmpi slt, %5, %c0_i32_2 : i32
    %13 = vector.broadcast %12 : i1 to vector<1x256xi1>
    %14 = vector.broadcast %13 : vector<1x256xi1> to vector<1x256xi1>
    %15 = arith.xori %11, %14 : vector<1x256xi1>
    %16 = arith.andi %15, %9 : vector<1x256xi1>
    %17 = vector.broadcast %5 : i32 to vector<1x256xi32>
    %18 = arith.addi %7, %17 : vector<1x256xi32>
    %19 = arith.select %16, %18, %7 : vector<1x256xi1>, vector<1x256xi32>
    %c0_i32_3 = arith.constant 0 : i32
    %20 = vector.broadcast %c0_i32_3 : i32 to vector<1x256xi32>
    %21 = arith.cmpi sgt, %19, %20 : vector<1x256xi32>
    %c15_i32 = arith.constant 15 : i32
    %22 = vector.broadcast %c15_i32 : i32 to vector<1x256xi32>
    %23 = arith.cmpi slt, %19, %22 : vector<1x256xi32>
    %c0 = arith.constant 0 : index
    %c0_4 = arith.constant 0 : index
    %c0_5 = arith.constant 0 : index
    %c0_6 = arith.constant 0 : index
    %24 = vector.load %arg2[%c0, %c0_4, %c0_5, %c0_6] : memref<1x1x3x290xf32, #tpu.memory_space<vmem>>, vector<1x1x3x290xf32>
    %25 = vector.shape_cast %24 : vector<1x1x3x290xf32> to vector<3x290xf32>
    %26 = vector.extract_strided_slice %25 {offsets = [0, 0], sizes = [3, 256], strides = [1, 1]} : vector<3x290xf32> to vector<3x256xf32>
    %c0_i32_7 = arith.constant 0 : i32
    %27 = arith.sitofp %c0_i32_7 : i32 to f32
    %28 = vector.shape_cast %21 : vector<1x256xi1> to vector<1x256xi1>
    %29 = vector.broadcast %28 : vector<1x256xi1> to vector<3x256xi1>
    %30 = vector.broadcast %27 : f32 to vector<3x256xf32>
    %31 = arith.select %29, %26, %30 : vector<3x256xi1>, vector<3x256xf32>
    %32 = vector.extract_strided_slice %25 {offsets = [0, 1], sizes = [3, 256], strides = [1, 1]} : vector<3x290xf32> to vector<3x256xf32>
    %33 = vector.extract_strided_slice %25 {offsets = [0, 2], sizes = [3, 256], strides = [1, 1]} : vector<3x290xf32> to vector<3x256xf32>
    %c0_i32_8 = arith.constant 0 : i32
    %34 = arith.sitofp %c0_i32_8 : i32 to f32
    %35 = vector.shape_cast %23 : vector<1x256xi1> to vector<1x256xi1>
    %36 = vector.broadcast %35 : vector<1x256xi1> to vector<3x256xi1>
    %37 = vector.broadcast %34 : f32 to vector<3x256xf32>
    %38 = arith.select %36, %33, %37 : vector<3x256xi1>, vector<3x256xf32>
    %39 = vector.extract_strided_slice %25 {offsets = [0, 16], sizes = [3, 256], strides = [1, 1]} : vector<3x290xf32> to vector<3x256xf32>
    %c0_i32_9 = arith.constant 0 : i32
    %40 = arith.sitofp %c0_i32_9 : i32 to f32
    %41 = vector.shape_cast %21 : vector<1x256xi1> to vector<1x256xi1>
    %42 = vector.broadcast %41 : vector<1x256xi1> to vector<3x256xi1>
    %43 = vector.broadcast %40 : f32 to vector<3x256xf32>
    %44 = arith.select %42, %39, %43 : vector<3x256xi1>, vector<3x256xf32>
    %45 = vector.extract_strided_slice %25 {offsets = [0, 17], sizes = [3, 256], strides = [1, 1]} : vector<3x290xf32> to vector<3x256xf32>
    %46 = vector.extract_strided_slice %25 {offsets = [0, 18], sizes = [3, 256], strides = [1, 1]} : vector<3x290xf32> to vector<3x256xf32>
    %c0_i32_10 = arith.constant 0 : i32
    %47 = arith.sitofp %c0_i32_10 : i32 to f32
    %48 = vector.shape_cast %23 : vector<1x256xi1> to vector<1x256xi1>
    %49 = vector.broadcast %48 : vector<1x256xi1> to vector<3x256xi1>
    %50 = vector.broadcast %47 : f32 to vector<3x256xf32>
    %51 = arith.select %49, %46, %50 : vector<3x256xi1>, vector<3x256xf32>
    %52 = vector.extract_strided_slice %25 {offsets = [0, 32], sizes = [3, 256], strides = [1, 1]} : vector<3x290xf32> to vector<3x256xf32>
    %c0_i32_11 = arith.constant 0 : i32
    %53 = arith.sitofp %c0_i32_11 : i32 to f32
    %54 = vector.shape_cast %21 : vector<1x256xi1> to vector<1x256xi1>
    %55 = vector.broadcast %54 : vector<1x256xi1> to vector<3x256xi1>
    %56 = vector.broadcast %53 : f32 to vector<3x256xf32>
    %57 = arith.select %55, %52, %56 : vector<3x256xi1>, vector<3x256xf32>
    %58 = vector.extract_strided_slice %25 {offsets = [0, 33], sizes = [3, 256], strides = [1, 1]} : vector<3x290xf32> to vector<3x256xf32>
    %59 = vector.extract_strided_slice %25 {offsets = [0, 34], sizes = [3, 256], strides = [1, 1]} : vector<3x290xf32> to vector<3x256xf32>
    %c0_i32_12 = arith.constant 0 : i32
    %60 = arith.sitofp %c0_i32_12 : i32 to f32
    %61 = vector.shape_cast %23 : vector<1x256xi1> to vector<1x256xi1>
    %62 = vector.broadcast %61 : vector<1x256xi1> to vector<3x256xi1>
    %63 = vector.broadcast %60 : f32 to vector<3x256xf32>
    %64 = arith.select %62, %59, %63 : vector<3x256xi1>, vector<3x256xf32>
    %65 = tpu.concatenate %31, %32, %38, %44, %45, %51, %57, %58, %64 in 0 : vector<3x256xf32>, vector<3x256xf32>, vector<3x256xf32>, vector<3x256xf32>, vector<3x256xf32>, vector<3x256xf32>, vector<3x256xf32>, vector<3x256xf32>, vector<3x256xf32> -> vector<27x256xf32>
    %c0_13 = arith.constant 0 : index
    %c0_14 = arith.constant 0 : index
    %66 = vector.load %arg3[%c0_13, %c0_14] : memref<48x27xf32, #tpu.memory_space<vmem>>, vector<48x27xf32>
    %cst = arith.constant dense<0.000000e+00> : vector<48x256xf32>
    %67 = tpu.matmul %66, %65, %cst {dimension_numbers = #tpu.dot_dimension_numbers<[1], [0], [0], [1], [0, 0, 1, 1], [], []>} : vector<48x27xf32>, vector<27x256xf32>, vector<48x256xf32> -> vector<48x256xf32>
    %c0_15 = arith.constant 0 : index
    %c0_16 = arith.constant 0 : index
    %c0_17 = arith.constant 0 : index
    %68 = vector.load %arg4[%c0_15, %c0_16, %c0_17] : memref<1x48x256xf32, #tpu.memory_space<vmem>>, vector<1x48x256xf32>
    %69 = vector.shape_cast %68 : vector<1x48x256xf32> to vector<48x256xf32>
    %70 = vector.shape_cast %67 : vector<48x256xf32> to vector<1x48x256xf32>
    tpu.vector_store %arg4[%c0_15, %c0_16, %c0_17], %70 {strides = array<i32>} : memref<1x48x256xf32, #tpu.memory_space<vmem>>, vector<1x48x256xf32>,
    return
  }
  func.func @transform_0(%arg0: i32, %arg1: i32) -> (i32, i32, i32, i32) {
    %c0_i32 = arith.constant 0 : i32
    %c0_i32_0 = arith.constant 0 : i32
    %c0_i32_1 = arith.constant 0 : i32
    return %arg0, %arg1, %c0_i32, %c0_i32_0 : i32, i32, i32, i32
  }
  func.func @transform_1(%arg0: i32, %arg1: i32) -> (i32, i32) {
    %c0_i32 = arith.constant 0 : i32
    %c0_i32_0 = arith.constant 0 : i32
    %c0_i32_1 = arith.constant 0 : i32
    return %c0_i32, %c0_i32_0 : i32, i32
  }
  func.func @transform_2(%arg0: i32, %arg1: i32) -> (i32, i32, i32) {
    %c0_i32 = arith.constant 0 : i32
    %c0_i32_0 = arith.constant 0 : i32
    return %arg0, %c0_i32, %arg1 : i32, i32, i32
  }
}

</mosaic_0001>

<bundles_post_ra>
// kernel: tpu_custom_call.1
= control target key start
LH: loop header
LB: loop body
LE: loop exit
PB: predicated region body
PF: predicated region fallthrough
CT: control target
= control target key end

     0   :  { %7 = vsyncpa [#allocation3], 0  ;;  %s1090_s0 = inlined_call_operand.vmem [shape: f32[2,1,3,290], index: 0, kind: input, shape index: {}]   ;;  %s1091_s1 = inlined_call_operand.vmem [shape: f32[48,27], index: 1, kind: input, shape index: {}]   ;;  %s1092_s2 = inlined_call_operand.hbm [shape: f32[2,48,256], index: 2, kind: output, shape index: {}]  }
   0x1   :  { %9 = vsyncpa [#allocation3 + $0x1], 0  ;;  %s875_s9 = smov 0   ;;  %s877_s10 = smov 0  }
   0x2   :  { %s879_s11 = smov 0   ;;  %s881_s12 = smov 0  }
   0x3   :  { %s883_s13 = smov 0   ;;  %s885_s14 = smov 0  }
   0x4 LB: > { %s636_s15 = sadd.s32 4294967295, %s848_s14   ;;  %s637_s16 = sadd.s32 4294967294, %s848_s14   ;;  %s848_s14 = sphi %s885_s14, %s15_s14   ;;  %s844_s13 = sphi %s883_s13, %s1107_s13   ;;  %s840_s12 = sphi %s881_s12, %s1106_s12   ;;  %s836_s11 = sphi %s879_s11, %s1105_s11   ;;  %s832_s10 = sphi %s877_s10, %s1104_s10   ;;  %s828_s9 = sphi %s875_s9, %s1103_s9  }
   0x5   : > { %s27_s17 = sadd.s32 1, %s844_s13  ;;  %s85_s18 = sadd.s32 1, %s836_s11 }
   0x6   : > { %p29_p0 = scmp.ge.s32.totalorder %s27_s17, 2  ;;  %p95_p1 = scmp.ne.s32.totalorder %s836_s11, %s832_s10 }
   0x7   : > { %p96_p2 = scmp.eq.s32.totalorder %s636_s15, 1  ;;  %p101_p3 = scmp.ne.s32.totalorder %s832_s10, %s828_s9 }
   0x8   : > { %s1109_s17 = smov (%p29_p0, %s27_s17), 0  ;;  %p102_p5 = scmp.eq.s32.totalorder %s637_s16, 1 }
   0x9   : > { %p915_p4 = por %p96_p2, %p95_p1  ;;  %s80_s20 = ssub.s32 %s844_s13, %s1109_s17 }
   0xa   : > { %p640_p6 = scmp.ge.s32.totalorder %s848_s14, 1  ;;  %p83_p7 = scmp.eq.s32.totalorder %s80_s20, 0 }
   0xb   : > { %p922_p8 = por %p102_p5, %p101_p3  ;;  %p135_p9 = scmp.lt.s32.totalorder %s848_s14, 3 }
   0xc   : > { %s928_s22 = scalar_select %p83_p7, %s836_s11, %s85_s18  }
   0xd   : > { %p136_p10 = pnand %p640_p6, %p135_p9 }
   0xe   : > { %p161_p11 = scmp.lt.s32.totalorder (!%p136_p10), %s840_s12, 1  ;;  %s850_s28 = smov (!%p136_p10), 126  }
   0xf   : > { %139 = sbr.rel (%p136_p10) target bundleno = 375 (0x177), region = 28  ;;  %s851_s29 = smov (!%p136_p10), 112  }
  0x10   : > { %s852_s30 = smov (!%p136_p10), 110   ;;  %s853_s3 = smov (!%p136_p10), 96  }
  0x11   : > { %s854_s4 = smov (!%p136_p10), 94   ;;  %s855_s5 = smov (!%p136_p10), 95  }
  0x12   : > { %s856_s6 = smov (!%p136_p10), 111   ;;  %s857_s7 = smov (!%p136_p10), 127  }
  0x13   : > { %s790_s25 = scalar_lea.hbm (!%p136_p10), %s1092_s2, 192 }
  0x14   : > { %s162_s23 = scalar_select %p161_p11, %s840_s12, 1  ;;  %v172_v47 = vlaneseq  ;;  %vm275_vm0 = vcmask 900096   ;;  %vm294_vm1 = vcmask 785408   ;;  %vm313_vm4 = vcmask 769024   ;;  %v424_v60 = vld [vmem:[%s1091_s1 + $0x8] sm:$0xff] }
  0x15   : > { %vm402_vm5 = vcmask 1042432   ;;  %vm397_vm7 = vcmask 777216   ;;  %vm417_vm8 = vcmask 1041408   ;;  %vm420_vm9 = vcmask 1044480  }
  0x16   : > { %s668_s24 = smul.u32 12, %s162_s23  ;;  %v173_v50 = vand.u32 127, %v172_v47  ;;  %vm237_vm10 = vcmask 1031168   ;;  %vm256_vm11 = vcmask 916480   ;;  %vm365_vm13 = vcmask 908288  }
  0x17   : > { %vm408_vm14 = vcmask 1040384   ;;  %vm411_vm15 = vcmask 1043456  }
  0x18   : > { %s169_s27 = scalar_lea.vmem %s1090_s0, %s668_s24  ;;  %v182_v52 = vand.u32 15, %v173_v50  ;;  %v174_v58 = vadd.s32 128, %v173_v50 }
  0x19   : > { %v207_v0 = vld [vmem:[%s169_s27 + $0x8] sm:$0x7]  ;;  %v935_v1 = vld [vmem:[%s169_s27] sm:$0x77] }
  0x1a   : > { %227 = vst [vmem:[#allocation1 + $0x10] ss:$2 sm:$0xff] %v207_v0  ;;  %vm956_vm2 = vcmp.gt.s32.totalorder %v182_v52, 0  ;;  %vm960_vm3 = vcmp.lt.s32.totalorder %v182_v52, 15 }
  0x1b   : > { %213 = vst [vmem:[#allocation1] ss:$2 sm:$0xff] %v935_v1 }
  0x21   : > { %v230_v2 = vld.sshfl [vmem:[#allocation1 + $0x10] sm:$0xff pattern:$0x75316420] }
  0x22   : > { %246 = vst [vmem:[#allocation1 + $0x10] ss:$2 sm:$0xff] %v207_v0  ;;  %v938_v3 = vld.sshfl [vmem:[#allocation1] sm:$0xff pattern:$0x75316420]  ;;  %235 = vrot.lane.b32.xlu2 %v230_v2, %s850_s28 }
  0x23   : > { %v940_v4 = vld.sshfl [vmem:[#allocation1 + $0x8] sm:$0xff pattern:$0x75316420]  ;;  %v218_v61 = vsel %vm956_vm2, %v938_v3, 0.0  ;;  %v423_v3 = vld [vmem:[%s1091_s1] sm:$0xff] }
  0x24   : > { %225 = vst [vmem:[#allocation1] ss:$2 sm:$0xff] %v935_v1 }
  0x29   : > { %v249_v5 = vld.sshfl [vmem:[#allocation1 + $0x10] sm:$0xff pattern:$0x75316420] }
  0x2a   : > { %265 = vst [vmem:[#allocation1 + $0x10] ss:$2 sm:$0xff] %v207_v0  ;;  %254 = vrot.lane.b32.xlu1 %v249_v5, %s851_s29 }
  0x2b   : > { %v228_v6 = vld.sshfl [vmem:[#allocation1] sm:$0xff pattern:$0x75316420]  ;;  %v229_v7 = vld.sshfl [vmem:[#allocation1 + $0x8] sm:$0xff pattern:$0x75316420] }
  0x2c   : > { %244 = vst [vmem:[#allocation1] ss:$2 sm:$0xff] %v935_v1  ;;  %v735_v8 = vpack.i.bf16 %v229_v7, %v228_v6 }
  0x2e   : > { %736 = vrot.lane.b32.xlu2 %v735_v8, %s850_s28 }
  0x31   : > { %v268_v9 = vld.sshfl [vmem:[#allocation1 + $0x10] sm:$0xff pattern:$0x75316420] }
  0x32   : > { %273 = vrot.lane.b32.xlu0 %v268_v9, %s852_s30  ;;  %284 = vst [vmem:[#allocation1 + $0x10] ss:$2 sm:$0xff] %v207_v0  ;;  %v428_v9 = vld [vmem:[%s1091_s1 + $0x28] sm:$0xff] }
  0x33   : > { %v247_v10 = vld.sshfl [vmem:[#allocation1] sm:$0xff pattern:$0x75316420]  ;;  %v248_v11 = vld.sshfl [vmem:[#allocation1 + $0x8] sm:$0xff pattern:$0x75316420] }
  0x34   : > { %263 = vst [vmem:[#allocation1] ss:$2 sm:$0xff] %v935_v1  ;;  %v740_v12 = vpack.i.bf16 %v248_v11, %v247_v10 }
  0x39   : > { %v287_v13 = vld.sshfl [vmem:[#allocation1 + $0x10] sm:$0xff pattern:$0x75316420] }
  0x3a   : > { %741 = vrot.lane.b32.xlu0 %v740_v12, %s851_s29  ;;  %292 = vrot.lane.b32.xlu1 %v287_v13, %s853_s3  ;;  %303 = vst [vmem:[#allocation1 + $0x10] ss:$2 sm:$0xff] %v207_v0 }
  0x3b   : > { %v266_v14 = vld.sshfl [vmem:[#allocation1] sm:$0xff pattern:$0x75316420]  ;;  %v267_v15 = vld.sshfl [vmem:[#allocation1 + $0x8] sm:$0xff pattern:$0x75316420] }
  0x3c   : > { %282 = vst [vmem:[#allocation1] ss:$2 sm:$0xff] %v935_v1  ;;  %v745_v16 = vpack.i.bf16 %v267_v15, %v266_v14 }
  0x41   : > { %v306_v17 = vld.sshfl [vmem:[#allocation1 + $0x10] sm:$0xff pattern:$0x75316420] }
  0x42   : > { %746 = vrot.lane.b32.xlu0 %v745_v16, %s852_s30  ;;  %322 = vst [vmem:[#allocation1 + $0x10] ss:$2 sm:$0xff] %v207_v0  ;;  %s158_s30 = sand.u32 1, %s832_s10  }
  0x43   : > { %v285_v18 = vld.sshfl [vmem:[#allocation1] sm:$0xff pattern:$0x75316420]  ;;  %v286_v19 = vld.sshfl [vmem:[#allocation1 + $0x8] sm:$0xff pattern:$0x75316420] }
  0x44   : > { %v750_v20 = vpack.i.bf16 %v286_v19, %v285_v18  ;;  %301 = vst [vmem:[#allocation1] ss:$2 sm:$0xff] %v935_v1 }
  0x46   : > { %751 = vrot.lane.b32.xlu1 %v750_v20, %s853_s3  ;;  %s667_s3 = smul.u32 96, %s158_s30 }
  0x49   : > { %v325_v21 = vld.sshfl [vmem:[#allocation1 + $0x10] sm:$0xff pattern:$0x75316420] }
  0x4a   : > { %355 = vst [vmem:[#allocation1 + $0x11] ss:$2 sm:$0xff] %v207_v0  ;;  %v328_v35 = vrot.slane %v325_v21, 5 }
  0x4b   : > { %v305_v22 = vld.sshfl [vmem:[#allocation1 + $0x8] sm:$0xff pattern:$0x75316420]  ;;  %v304_v23 = vld.sshfl [vmem:[#allocation1] sm:$0xff pattern:$0x75316420] }
  0x4c   : > { %309 = vrot.lane.b32.xlu0 %v305_v22, %s854_s4  ;;  %320 = vst [vmem:[#allocation1] ss:$2 sm:$0xff] %v935_v1  ;;  %307 = vrot.lane.b32.xlu2 %v304_v23, %s854_s4 }
  0x4e   : > { %311 = vrot.lane.b32.xlu1 %v306_v17, %s854_s4  ;;  %s160_s4 = scalar_lea.vmem [#allocation2], %s667_s3 }
  0x4f   : > { %s551_s15 = sshll.u32 %s160_s4, 4  ;;  %s552_s15 = int_to_ptr.vmem [resolvable:$true] %s551_s15 }
  0x51   : > { %v358_v24 = vld.sshfl [vmem:[#allocation1 + $0x10] sm:$0xff pattern:$0x75316420] }
  0x52   : > { %384 = vst [vmem:[#allocation1 + $0x10] ss:$2 sm:$0xff] %v207_v0  ;;  %v189_v0 = vand.u32 15, %v174_v58 }
  0x53   : > { %v323_v25 = vld.sshfl [vmem:[#allocation1] sm:$0xff pattern:$0x75316420]  ;;  %v324_v26 = vld.sshfl [vmem:[#allocation1 + $0x8] sm:$0xff pattern:$0x75316420] }
  0x54   : > { %353 = vst [vmem:[#allocation1 + $0x1] ss:$2 sm:$0xff] %v935_v1  ;;  %v326_v32 = vrot.slane %v323_v25, 5  ;;  %v327_v33 = vrot.slane %v324_v26, 5  ;;  %vm974_vm6 = vcmp.lt.s32.totalorder %v189_v0, 15  ;;  %vm989_vm12 = vcmp.gt.s32.totalorder %v189_v0, 0 }
  0x56   : > { %v765_v34 = vpack.i.bf16 %v327_v33, %v326_v32 }
  0x59   : > { %v387_v27 = vld.sshfl [vmem:[#allocation1 + $0x10] sm:$0xff pattern:$0x75316420] }
  0x5a   : > { %v390_v28 = vrot.slane %v387_v27, 3 }
  0x5b   : > { %v356_v29 = vld.sshfl [vmem:[#allocation1] sm:$0xff pattern:$0x75316420]  ;;  %v357_v30 = vld.sshfl [vmem:[#allocation1 + $0x8] sm:$0xff pattern:$0x75316420] }
  0x5c   : > { %395 = vrot.lane.b32.xlu0 %v390_v28, %s855_s5  ;;  %v755_v31 = vpack.i.bf16 %v357_v30, %v356_v29  ;;  %382 = vst [vmem:[#allocation1] ss:$2 sm:$0xff] %v935_v1 }
  0x5e   : > { %756 = vrot.lane.b32.xlu1 %v755_v31, %s856_s6 }
  0x63   : > { %v385_v36 = vld.sshfl [vmem:[#allocation1] sm:$0xff pattern:$0x75316420]  ;;  %v386_v37 = vld.sshfl [vmem:[#allocation1 + $0x8] sm:$0xff pattern:$0x75316420] }
  0x64   : > { %766 = vrot.lane.b32.xlu0 %v765_v34, %s857_s7  ;;  %v388_v38 = vrot.slane %v385_v36, 3  ;;  %v389_v39 = vrot.slane %v386_v37, 3 }
  0x66   : > { %333 = vrot.lane.b32.xlu1 %v328_v35, %s857_s7  ;;  %v760_v40 = vpack.i.bf16 %v389_v39, %v388_v38 }
  0x68   : > { %761 = vrot.lane.b32.xlu2 %v760_v40, %s855_s5  ;;  %s669_s5 = smul.u32 96, %s840_s12  ;;  %s537_s12 = scalar_lea.sflag [#allocation3], %s158_s30 }
  0x6a   : > { %s550_s8 = scalar_lea.hbm %s1092_s2, %s669_s5 }
  0x6b   : > { %s553_s16 = sshll.u32 %s550_s8, 4  ;;  %s554_s16 = int_to_ptr.hbm [resolvable:$true] %s553_s16 }
  0x6c   : > { %s784_s18 = sshra.s32 %s554_s16, 4  ;;  %s785_s18 = int_to_ptr.hbm [resolvable:$true] %s784_s18 }
  0x6d   : > { %s786_s20 = scalar_lea.hbm %s785_s18, 96  ;;  %p791_p1 = scmp.lt.s32.totalorder %s785_s18, %s1092_s2 }
  0x6e   : > { %p787_p12 = scmp.ne.s32.totalorder %s785_s18, %s786_s20  ;;  %p792_p2 = scmp.lt.s32.totalorder %s790_s25, %s786_s20 }
  0x70   : > { %363 = vrot.lane.b32.xlu2 %v358_v24, %s856_s6  ;;  %p788_p13 = pnand %p787_p12, %p915_p4  ;;  %p793_p3 = por %p792_p2, %p791_p1 }
  0x72   : > { %p789_p0 = pneg %p788_p13 }
  0x74   : > { %p794_p5 = pnand %p793_p3, %p789_p0 }
  0x7c   : > { %v236_v43 = vpop.permute.xlu2 %235 }
  0x88   : > { %v737_v46 = vpop.permute.xlu2 %736 }
  0x89   : > { %v739_v16 = vunpack.i.h.bf16 %v737_v46  ;;  %v738_v17 = vunpack.i.l.bf16 %v737_v46 }
  0x8b   : > { %v238_v25 = vsel %vm237_vm10, %v738_v17, %v739_v16  ;;  %v239_v26 = vsel %vm237_vm10, %v739_v16, %v236_v43 }
  0x8c   : > { %v242_v31 = vsel %vm960_vm3, %v238_v25, 0.0  ;;  %v243_v32 = vsel %vm974_vm6, %v239_v26, 0.0 }
  0x8d   : > { %v342_v37 = vrot.slane %v242_v31, 2  ;;  %v343_v38 = vrot.slane %v243_v32, 2 }
  0x9c   : > { %v950_v42 = vpop.permute.xlu1 %254 }
  0xa4   : > { %v274_v41 = vpop.permute.xlu0 %273 }
  0xa6   : > { %v308_v54 = vpop.permute.xlu2 %307 }
  0xac   : > { %v952_v44 = vpop.permute.xlu0 %741  ;;  %v293_v45 = vpop.permute.xlu1 %292 }
  0xad   : > { %v744_v18 = vunpack.i.h.bf16 %v952_v44  ;;  %v743_v19 = vunpack.i.l.bf16 %v952_v44 }
  0xaf   : > { %v258_v28 = vsel %vm256_vm11, %v744_v18, %v950_v42  ;;  %v257_v29 = vsel %vm256_vm11, %v743_v19, %v744_v18 }
  0xb0   : > { %v261_v34 = vsel %vm956_vm2, %v257_v29, 0.0  ;;  %v262_v35 = vsel %vm989_vm12, %v258_v28, 0.0 }
  0xb1   : > { %v348_v40 = vrot.slane %v261_v34, 7 }
  0xb4   : > { %v747_v48 = vpop.permute.xlu0 %746 }
  0xb5   : > { %v748_v49 = vunpack.i.l.bf16 %v747_v48  ;;  %v749_v51 = vunpack.i.h.bf16 %v747_v48 }
  0xb7   : > { %v276_v57 = vsel %vm275_vm0, %v748_v49, %v749_v51  ;;  %v277_v24 = vsel %vm275_vm0, %v749_v51, %v274_v41  ;;  %v349_v41 = vrot.slane %v262_v35, 7  ;;  %vm414_vm0 = vcmask 1046528  }
  0xb8   : > { %v752_v53 = vpop.permute.xlu1 %751  ;;  %v280_v62 = vsel %vm960_vm3, %v276_v57, 0.0  ;;  %v281_v30 = vsel %vm974_vm6, %v277_v24, 0.0  ;;  %v409_v51 = vsel %vm408_vm14, %v342_v37, %v348_v40 }
  0xb9   : > { %v754_v55 = vunpack.i.h.bf16 %v752_v53  ;;  %v753_v56 = vunpack.i.l.bf16 %v752_v53  ;;  %v968_v5 = vrot.slane %v280_v62, 1  ;;  %v373_v36 = vrot.slane %v281_v30, 1 }
  0xba   : > { %v410_v52 = vsel %vm408_vm14, %v343_v38, %v349_v41  ;;  %v219_v62 = vsel %vm989_vm12, %v940_v4, 0.0  ;;  %v427_v4 = vld [vmem:[%s1091_s1 + $0x20] sm:$0xff] }
  0xbb   : > { %v295_v59 = vsel %vm294_vm1, %v753_v56, %v754_v55  ;;  %v296_v20 = vsel %vm294_vm1, %v754_v55, %v293_v45  ;;  %vm335_vm1 = vcmask 1039360  }
  0xbc   : > { %v299_v63 = vsel %vm956_vm2, %v295_v59, 0.0  ;;  %v300_v27 = vsel %vm989_vm12, %v296_v20, 0.0 }
  0xbd   : > { %v378_v6 = vrot.slane %v299_v63, 6  ;;  %v379_v33 = vrot.slane %v300_v27, 6 }
  0xbe   : > { %v310_v1 = vpop.permute.xlu0 %309 }
  0xbf   : > { %v314_v2 = vsel %vm313_vm4, %v308_v54, %v310_v1  ;;  %v418_v15 = vsel %vm417_vm8, %v968_v5, %v378_v6  ;;  %v419_v43 = vsel %vm417_vm8, %v373_v36, %v379_v33 }
  0xc0   : > { %v318_v7 = vsel %vm960_vm3, %v314_v2, 0.0  ;;  %v312_v8 = vpop.permute.xlu1 %311  ;;  %vm405_vm3 = vcmask 1045504  }
  0xc1   : > { %642 = vmatpush.msk.msra.mxu0 %vm402_vm5, %v318_v7  ;;  %659 = vmatpush.msk.msra.mxu2 %vm402_vm5, %v318_v7  ;;  %v315_v10 = vsel %vm313_vm4, %v310_v1, %v312_v8  ;;  %v426_v8 = vld [vmem:[%s1091_s1 + $0x18] sm:$0xff]  ;;  %vm429_vm4 = vcmask 220160  }
  0xc2   : > { %v762_v11 = vpop.permute.xlu2 %761  ;;  %v319_v12 = vsel %vm974_vm6, %v315_v10, 0.0  ;;  %v425_v10 = vld [vmem:[%s1091_s1 + $0x10] sm:$0xff] }
  0xc3   : > { %v764_v13 = vunpack.i.h.bf16 %v762_v11  ;;  %v763_v14 = vunpack.i.l.bf16 %v762_v11  ;;  %649 = vmatpush.msk.msra.mxu1 %vm402_vm5, %v319_v12  ;;  %663 = vmatpush.msk.msra.mxu3 %vm402_vm5, %v319_v12 }
  0xc5   : > { %v398_v21 = vsel %vm397_vm7, %v763_v14, %v764_v13 }
  0xc6   : > { %v421_v22 = vsel %vm420_vm9, %v418_v15, %v398_v21 }
  0xc7   : > { %467 = vmatpush.msra.mxu0 %v421_v22  ;;  %660 = vmatpush.msra.mxu2 %v421_v22 }
  0xca   : > { %v364_v45 = vpop.permute.xlu2 %363 }
  0xce   : > { %v396_v39 = vpop.permute.xlu0 %395 }
  0xcf   : > { %v399_v42 = vsel %vm397_vm7, %v764_v13, %v396_v39 }
  0xd0   : > { %v757_v44 = vpop.permute.xlu1 %756  ;;  %v422_v46 = vsel %vm420_vm9, %v419_v43, %v399_v42 }
  0xd1   : > { %v759_v47 = vunpack.i.h.bf16 %v757_v44  ;;  %v758_v48 = vunpack.i.l.bf16 %v757_v44  ;;  %502 = vmatpush.msra.mxu1 %v422_v46  ;;  %664 = vmatpush.msra.mxu3 %v422_v46 }
  0xd3   : > { %v367_v49 = vsel %vm365_vm13, %v759_v47, %v364_v45  ;;  %v366_v50 = vsel %vm365_vm13, %v758_v48, %v759_v47 }
  0xd4   : > { %v412_v53 = vsel %vm411_vm15, %v409_v51, %v366_v50  ;;  %v413_v54 = vsel %vm411_vm15, %v410_v52, %v367_v49 }
  0xd5   : > { %v415_v55 = vsel %vm414_vm0, %v412_v53, %v968_v5  ;;  %v416_v56 = vsel %vm414_vm0, %v413_v54, %v373_v36 }
  0xd6   : > { %468 = vmatpush.msra.mxu0 %v415_v55  ;;  %661 = vmatpush.msra.mxu2 %v415_v55  ;;  %v767_v57 = vpop.permute.xlu0 %766 }
  0xd7   : > { %503 = vmatpush.msra.mxu1 %v416_v56  ;;  %665 = vmatpush.msra.mxu3 %v416_v56  ;;  %v769_v58 = vunpack.i.h.bf16 %v767_v57  ;;  %v768_v59 = vunpack.i.l.bf16 %v767_v57 }
  0xd8   : > { %v334_v63 = vpop.permute.xlu1 %333 }
  0xd9   : > { %v337_v0 = vsel %vm335_vm1, %v769_v58, %v334_v63  ;;  %v336_v1 = vsel %vm335_vm1, %v768_v59, %v769_v58 }
  0xda   : > { %v403_v2 = vsel %vm402_vm5, %v218_v61, %v336_v1  ;;  %v404_v5 = vsel %vm402_vm5, %v219_v62, %v337_v0 }
  0xdb   : > { %v406_v6 = vsel %vm405_vm3, %v403_v2, %v342_v37  ;;  %v407_v7 = vsel %vm405_vm3, %v404_v5, %v343_v38 }
  0xdc   : > { %469 = vmatpush.msra.mxu0 %v406_v6  ;;  %662 = vmatpush.msra.mxu2 %v406_v6 }
  0xdd   : > { %504 = vmatpush.msra.mxu1 %v407_v7  ;;  %666 = vmatpush.msra.mxu3 %v407_v7 }
  0xde   : > { %646 = vmatmul.msk.f32.vlgmr.msra.gmra.mxu2 %vm429_vm4, %v426_v8  ;;  %653 = vmatmul.msk.f32.vlgmr.msra.gmra.mxu3 %vm429_vm4, %v426_v8 }
  0xdf   : > { %643 = vmatmul.msk.f32.vlgmr.msra.gmra.mxu0 %vm429_vm4, %v423_v3  ;;  %650 = vmatmul.msk.f32.vlgmr.msra.gmra.mxu1 %vm429_vm4, %v423_v3 }
  0xe6   : > { %647 = vmatmul.msk.f32.gmra.mxu2 %vm429_vm4, %v427_v4  ;;  %654 = vmatmul.msk.f32.gmra.mxu3 %vm429_vm4, %v427_v4 }
  0xe7   : > { %644 = vmatmul.msk.f32.gmra.mxu0 %vm429_vm4, %v424_v60  ;;  %651 = vmatmul.msk.f32.gmra.mxu1 %vm429_vm4, %v424_v60 }
  0xee   : > { %648 = vmatmul.msk.f32.gmra.mxu2 %vm429_vm4, %v428_v9  ;;  %655 = vmatmul.msk.f32.gmra.mxu3 %vm429_vm4, %v428_v9 }
  0xef   : > { %645 = vmatmul.msk.f32.gmra.mxu0 %vm429_vm4, %v425_v10  ;;  %652 = vmatmul.msk.f32.gmra.mxu1 %vm429_vm4, %v425_v10 }
 0x15c   : > { %v471_v11 = vpop.f32.mrf.mxu0  ;;  %v506_v12 = vpop.f32.mrf.mxu1 }
 0x15d   : > { %524 = vst [vmem:[%s160_s4] sm:$0xff] %v471_v11 }
 0x15e   : > { %525 = vst [vmem:[%s160_s4 + $0x8] sm:$0xff] %v506_v12 }
 0x161   : > { %v480_v13 = vpop.f32.mrf.mxu2  ;;  %v515_v14 = vpop.f32.mrf.mxu3 }
 0x162   : > { %530 = vst [vmem:[%s160_s4 + $0x30] sm:$0xff] %v480_v13 }
 0x163   : > { %531 = vst [vmem:[%s160_s4 + $0x38] sm:$0xff] %v515_v14 }
 0x164   : > { %v474_v15 = vpop.f32.mrf.mxu0  ;;  %v509_v16 = vpop.f32.mrf.mxu1 }
 0x165   : > { %526 = vst [vmem:[%s160_s4 + $0x10] sm:$0xff] %v474_v15 }
 0x166   : > { %527 = vst [vmem:[%s160_s4 + $0x18] sm:$0xff] %v509_v16 }
 0x169   : > { %v483_v17 = vpop.f32.mrf.mxu2  ;;  %v518_v18 = vpop.f32.mrf.mxu3 }
 0x16a   : > { %532 = vst [vmem:[%s160_s4 + $0x40] sm:$0xff] %v483_v17 }
 0x16b   : > { %533 = vst [vmem:[%s160_s4 + $0x48] sm:$0xff] %v518_v18 }
 0x16c   : > { %v477_v19 = vpop.f32.mrf.mxu0  ;;  %v512_v20 = vpop.f32.mrf.mxu1 }
 0x16d   : > { %528 = vst [vmem:[%s160_s4 + $0x20] sm:$0xff] %v477_v19 }
 0x16e   : > { %529 = vst [vmem:[%s160_s4 + $0x28] sm:$0xff] %v512_v20 }
 0x171   : > { %v486_v21 = vpop.f32.mrf.mxu2  ;;  %v521_v22 = vpop.f32.mrf.mxu3 }
 0x172   : > { %534 = vst [vmem:[%s160_s4 + $0x50] sm:$0xff] %v486_v21 }
 0x173   : > { %535 = vst [vmem:[%s160_s4 + $0x58] sm:$0xff] %v521_v22 }
 0x174   : > { %797 = shalt.err (!%p794_p5)
}
 0x175   : > { %s858_s28 = smov 256   ;;  %s859_s29 = smov 16  }
 0x176   : > { %670 = dma.vmem_to_hbm [thread:$0]  (%p915_p4), %s552_s15, 1536, %s554_s16, %s537_s12, %s858_s28, %s858_s28, %s859_s29  }
 0x177 PF: > { %p676_p6 = scmp.ge.s32.totalorder %s848_s14, 2  ;;  %s568_s30 = sand.u32 1, %s828_s9  }
 0x178   : > { %s569_s3 = scalar_lea.sflag [#allocation3], %s568_s30 }
 0x179   : > { %p673_p7 = pnand %p676_p6, %p922_p8 }
 0x17b   : > { %p674_p9 = pneg %p673_p7 }
 0x17d   : > { %823 = dma.done.wait (%p674_p9), %s569_s3, 1536  }
 0x17e   : > { %825 = vsyncadd (%p674_p9), %s569_s3, 4294965760  ;;  %s15_s14 = sadd.s32 1, %s848_s14   ;;  %s1103_s9 = smov %s832_s10 }
 0x17f   : > { %p12_p10 = scmp.ge.s32.totalorder %s15_s14, 4   ;;  %s1104_s10 = smov %s836_s11 }
 0x180   : > { %s1105_s11 = smov %s928_s22  ;;  %s1106_s12 = smov %s844_s13 }
 0x181   : > { %s1107_s13 = smov %s1109_s17  ;;  %14 = sbr.rel (!%p12_p10) target bundleno = 4 (0x4), region = 72 }
 0x186   :  { %575 = vsyncpa [#allocation3], 1 }
 0x187   :  { %577 = vsyncpa [#allocation3 + $0x1], 1 }

</bundles_post_ra>
